<compile_context>
chip_gen: v7x
topology: tpu7x:2x2x1
jax: 0.10.0
libtpu: 0.0.40
codegen_flags: <defaults>
</compile_context>

<pallas_src>
import math
from functools import partial

import jax
import jax.numpy as jnp
from jax.experimental import pallas as pl
from jax.experimental.pallas import tpu as pltpu


# ----------------------------- Pallas kernel -------------------------------

def fused_mtl_kernel(x_ref, wb_ref, bb_ref, wc_ref, bc_ref, wm_ref, bm_ref,
                     wh_ref, bh_ref, o_ref, acc_ref, *, inv_n):
    """grid = (B, N // tile_n):
         axis 0 -> 'parallel' over batch samples (megacore on v7x),
         axis 1 -> 'arbitrary' reduction streaming contiguous strips of N.

    x_ref  : [1, tile_n, E] contiguous per-sample strip of the input
    acc_ref: [1, E] f32 running sum over N (VMEM scratch, persists per core)
    o_ref  : [1, 1, K_pad] lane-dense slab of all concatenated head outputs
    """
    n = pl.program_id(1)

    @pl.when(n == 0)
    def _():
        acc_ref[...] = jnp.zeros_like(acc_ref)

    # Tile-sum over N, accumulated in f32 even when x streams as bf16.
    acc_ref[...] += jnp.sum(x_ref[...].astype(jnp.float32), axis=1)

    @pl.when(n == pl.num_programs(1) - 1)
    def _():
        cdt = wb_ref.dtype                       # compute dtype of the chain
        # global average pool (commutes with the affine backbone Linear)
        pooled_x = (acc_ref[...] * inv_n).astype(cdt)                 # [1, E]
        # backbone Linear(E, E)
        h = jnp.dot(pooled_x, wb_ref[...],
                    preferred_element_type=jnp.float32) + bb_ref[...]
        # MTL_embedding_converter: Linear(E, D)
        conv = jnp.dot(h.astype(cdt), wc_ref[...],
                       preferred_element_type=jnp.float32) + bc_ref[...]
        # MTL_module_baseline: Linear(D, T*D) -> flat tokens [1, T*D]
        tokens = jnp.dot(conv.astype(cdt), wm_ref[...],
                         preferred_element_type=jnp.float32) + bm_ref[...]
        # all MTL heads at once via the block-diagonal weight [T*D, K_pad]
        heads = jnp.dot(tokens.astype(cdt), wh_ref[...],
                        preferred_element_type=jnp.float32) + bh_ref[...]
        o_ref[0] = heads.astype(o_ref.dtype)


# ------------------------------ parameters ---------------------------------

def xavier_uniform(key, fan_in, fan_out):
    """torch.nn.init.xavier_uniform_ for a Linear, stored as [in, out]."""
    bound = math.sqrt(6.0 / (fan_in + fan_out))
    return jax.random.uniform(key, (fan_in, fan_out), jnp.float32, -bound, bound)


def _k_pad(heads_configs):
    ksum = sum(heads_configs)
    return max(128, ((ksum + 127) // 128) * 128)


def build_params(key, embed_dim, mtl_dim, heads_configs):
    T = len(heads_configs)
    D = mtl_dim
    K_pad = _k_pad(heads_configs)
    ks = jax.random.split(key, 3 + T)

    params = {
        # backbone: Linear(E, E)
        "Wb": xavier_uniform(ks[0], embed_dim, embed_dim),
        "bb": jnp.zeros((1, embed_dim), jnp.float32),
        # MTL_embedding_converter: Linear(E, D)
        "Wc": xavier_uniform(ks[1], embed_dim, mtl_dim),
        "bc": jnp.zeros((1, mtl_dim), jnp.float32),
        # MTL_module_baseline: Linear(D, T*D)
        "Wm": xavier_uniform(ks[2], mtl_dim, T * mtl_dim),
        "bm": jnp.zeros((1, T * mtl_dim), jnp.float32),
    }

    # MTL heads folded into one block-diagonal weight [T*D, K_pad]
    Wh = jnp.zeros((T * D, K_pad), jnp.float32)
    bh = jnp.zeros((1, K_pad), jnp.float32)   # torch init: constant_(bias, 0)
    off = 0
    for t, k_t in enumerate(heads_configs):
        Wh = Wh.at[t * D:(t + 1) * D, off:off + k_t].set(
            xavier_uniform(ks[3 + t], mtl_dim, k_t))
        off += k_t
    params["Wh_blk"] = Wh
    params["bh_blk"] = bh
    return params


# ------------------------------ sizing helpers ------------------------------

def _round_up(v, m):
    return ((v + m - 1) // m) * m


def _tile_bytes(shape, dtype):
    """Approximate VMEM footprint of one buffer of `shape` with (8,128) padding."""
    itemsize = jnp.dtype(dtype).itemsize
    shape = tuple(shape)
    if len(shape) == 1:
        shape = (1,) + shape
    lead = 1
    for d in shape[:-2]:
        lead *= int(d)
    return lead * _round_up(int(shape[-2]), 8) * _round_up(int(shape[-1]), 128) * itemsize


def _choose_tile_n(N, E, itemsize, x_budget_bytes):
    """Largest tile_n (multiple of the sublane pack, dividing N) whose
    double-buffered strip [tile_n, E] fits the VMEM budget for the x stream."""
    pack = 8 if itemsize >= 4 else 16            # f32 vs bf16 sublane packing
    per_row = 2 * _round_up(E, 128) * itemsize   # double-buffered row bytes
    max_rows = max(pack, (x_budget_bytes // per_row) // pack * pack)
    best = None
    t = pack
    limit = min(N, max_rows)
    while t <= limit:
        if N % t == 0:
            best = t
        t += pack
    if best is None:
        best = N   # full-extent block is always a legal block shape
    return best


# ------------------------------ JAX wrapper --------------------------------

@partial(jax.jit, static_argnames=("mtl_dim", "heads_configs", "tile_n",
                                   "x_vmem_budget_bytes", "single_buffer_weights"))
def mtl_model_forward(x, params, *, mtl_dim, heads_configs, tile_n=None,
                      x_vmem_budget_bytes=16 * 1024 * 1024,
                      single_buffer_weights=False):
    """x: [B, N, E] (f32 or bf16) -> tuple of T arrays, t-th of shape [B, K_t]."""
    B, N, E = x.shape
    T = len(heads_configs)
    D = mtl_dim
    K_pad = _k_pad(heads_configs)
    itemsize = jnp.dtype(x.dtype).itemsize

    if tile_n is None:
        tile_n = _choose_tile_n(N, E, itemsize, x_vmem_budget_bytes)
    # TODO(synk): ragged WSI bag sizes (N % tile_n != 0) need a zero-padded /
    #             masked final tile; zero padding is safe because inv_n uses
    #             the true N.  The demo keeps N divisible by tile_n.
    assert N % tile_n == 0, "N must be divisible by tile_n"

    # Constant-index weight/bias specs.  Optionally single-buffer them
    # (pl.Buffered(1)) to halve the resident-weight VMEM at production sizes.
    const_kw = dict(pipeline_mode=pl.Buffered(1)) if single_buffer_weights else {}

    def const_spec(shape):
        return pl.BlockSpec(shape, lambda b, n, _s=len(shape): (0,) * _s, **const_kw)

    weight_keys = ("Wb", "bb", "Wc", "bc", "Wm", "bm", "Wh_blk", "bh_blk")
    weight_bufs = 1 if single_buffer_weights else 2
    weights_bytes = sum(_tile_bytes(params[k].shape, params[k].dtype)
                        for k in weight_keys)
    vmem_limit = (2 * _tile_bytes((1, tile_n, E), x.dtype)        # x double-buffer
                  + weight_bufs * weights_bytes                    # resident weights
                  + 2 * _tile_bytes((1, 1, K_pad), jnp.float32)    # output
                  + _tile_bytes((1, E), jnp.float32)               # accumulator
                  + (4 << 20))                                     # Mosaic headroom
    vmem_limit = int(min(max(vmem_limit, 8 << 20), 64 << 20))      # v7x-safe cap

    grid_spec = pltpu.PrefetchScalarGridSpec(
        num_scalar_prefetch=0,
        grid=(B, N // tile_n),
        in_specs=[
            # x: one contiguous per-sample strip per step
            pl.BlockSpec((1, tile_n, E), lambda b, n: (b, n, 0)),
            const_spec((E, E)),            # Wb
            const_spec((1, E)),            # bb
            const_spec((E, D)),            # Wc
            const_spec((1, D)),            # bc
            const_spec((D, T * D)),        # Wm
            const_spec((1, T * D)),        # bm
            const_spec((T * D, K_pad)),    # Wh (block-diagonal heads)
            const_spec((1, K_pad)),        # bh
        ],
        out_specs=pl.BlockSpec((1, 1, K_pad), lambda b, n: (b, 0, 0)),
        scratch_shapes=[pltpu.VMEM((1, E), jnp.float32)],
    )

    out = pl.pallas_call(
        partial(fused_mtl_kernel, inv_n=1.0 / N),
        out_shape=jax.ShapeDtypeStruct((B, 1, K_pad), jnp.float32),
        grid_spec=grid_spec,
        compiler_params=pltpu.CompilerParams(
            dimension_semantics=("parallel", "arbitrary"),
            vmem_limit_bytes=vmem_limit),
    )(x, params["Wb"], params["bb"], params["Wc"], params["bc"],
      params["Wm"], params["bm"], params["Wh_blk"], params["bh_blk"])

    heads_slab = out[:, 0, :]                    # [B, K_pad], lane-dense

    # Slice the slab back to per-task widths (list [T][B, K_t]).
    # TODO(synk): torch forward raises on NaN/Inf in head outputs; a
    #             data-dependent raise has no clean in-kernel equivalent.
    preds, off = [], 0
    for k_t in heads_configs:
        preds.append(heads_slab[:, off:off + k_t])
        off += k_t
    return tuple(preds)


# ------------------------------ reference ----------------------------------

def reference_forward(x, params, mtl_dim, heads_configs):
    """Pure-JAX f32 reference matching the PyTorch op order (backbone THEN pool)."""
    B = x.shape[0]
    T = len(heads_configs)
    D = mtl_dim
    f32 = jnp.float32
    x = x.astype(f32)
    Wb, bb = params["Wb"].astype(f32), params["bb"].astype(f32)
    Wc, bc = params["Wc"].astype(f32), params["bc"].astype(f32)
    Wm, bm = params["Wm"].astype(f32), params["bm"].astype(f32)
    Wh, bh = params["Wh_blk"].astype(f32), params["bh_blk"].astype(f32)

    h = jnp.einsum("bne,ef->bnf", x, Wb) + bb
    pooled = h.mean(axis=1)
    conv = pooled @ Wc + bc
    tokens = (conv @ Wm + bm).reshape(B, T, D)
    preds, off = [], 0
    for t, k_t in enumerate(heads_configs):
        preds.append(tokens[:, t] @ Wh[t * D:(t + 1) * D, off:off + k_t]
                     + bh[0, off:off + k_t])
        off += k_t
    return preds


# --------------------------------- main -------------------------------------

if __name__ == "__main__":
    B, N = 2, 16              # batch, tile_num (N streamed in strips)
    embed_dim = 32            # backbone feature dim E
    mtl_dim = 16              # MTL_feature_dim D (!= E -> Linear converter)
    heads_configs = (3, 5, 2)  # per-task output dims -> T = 3 MTL tokens

    key = jax.random.PRNGKey(0)
    kx, kp = jax.random.split(key)
    x = jax.random.normal(kx, (B, N, embed_dim), jnp.float32)
    params = build_params(kp, embed_dim, mtl_dim, heads_configs)

    # --- f32 path: tight check against the torch-order reference -----------
    preds = mtl_model_forward(x, params, mtl_dim=mtl_dim,
                              heads_configs=heads_configs)
    preds = jax.block_until_ready(preds)
    refs = reference_forward(x, params, mtl_dim, heads_configs)
    for t, (p, r) in enumerate(zip(preds, refs)):
        assert p.shape == (B, heads_configs[t]), (t, p.shape)
        assert jnp.allclose(p, r, atol=1e-4, rtol=1e-4), f"task {t} f32 mismatch"

    # --- bf16 streaming path (production config: halves HBM bytes) ---------
    x_bf16 = x.astype(jnp.bfloat16)
    params_bf16 = dict(params)
    for k in ("Wb", "Wc", "Wm", "Wh_blk"):
        params_bf16[k] = params[k].astype(jnp.bfloat16)
    preds_bf16 = mtl_model_forward(x_bf16, params_bf16, mtl_dim=mtl_dim,
                                   heads_configs=heads_configs)
    preds_bf16 = jax.block_until_ready(preds_bf16)
    refs_bf16 = reference_forward(x_bf16, params_bf16, mtl_dim, heads_configs)
    for t, (p, r) in enumerate(zip(preds_bf16, refs_bf16)):
        assert p.shape == (B, heads_configs[t]), (t, p.shape)
        assert jnp.allclose(p, r, atol=3e-2, rtol=3e-2), f"task {t} bf16 mismatch"

    print("KERNEL_OK")
</pallas_src>

<mosaic_0001>
module attributes {stable_mosaic.version = 11 : i64} {
  func.func @fused_mtl_kernel(%arg0: i32, %arg1: i32, %arg2: memref<1x16x32xf32, #tpu.memory_space<vmem>>, %arg3: memref<32x32xf32, #tpu.memory_space<vmem>>, %arg4: memref<1x32xf32, #tpu.memory_space<vmem>>, %arg5: memref<32x16xf32, #tpu.memory_space<vmem>>, %arg6: memref<1x16xf32, #tpu.memory_space<vmem>>, %arg7: memref<16x48xf32, #tpu.memory_space<vmem>>, %arg8: memref<1x48xf32, #tpu.memory_space<vmem>>, %arg9: memref<48x128xf32, #tpu.memory_space<vmem>>, %arg10: memref<1x128xf32, #tpu.memory_space<vmem>>, %arg11: memref<1x1x128xf32, #tpu.memory_space<vmem>>, %arg12: memref<1x32xf32, #tpu.memory_space<vmem>>) attributes {dimension_semantics = [#tpu.dimension_semantics<parallel>, #tpu.dimension_semantics<arbitrary>], iteration_bounds = array<i64: 2, 1>, scalar_prefetch = 0 : i64, scratch_operands = 1 : i64, tpu.core_type = #tpu.core_type<tc>, window_params = [{transform_indices = @transform_0, window_bounds = array<i64: 1, 16, 32>}, {pipeline_mode = #tpu.pipeline_mode<synchronous>, transform_indices = @transform_1, window_bounds = array<i64: 32, 32>}, {pipeline_mode = #tpu.pipeline_mode<synchronous>, transform_indices = @transform_2, window_bounds = array<i64: 1, 32>}, {pipeline_mode = #tpu.pipeline_mode<synchronous>, transform_indices = @transform_3, window_bounds = array<i64: 32, 16>}, {pipeline_mode = #tpu.pipeline_mode<synchronous>, transform_indices = @transform_4, window_bounds = array<i64: 1, 16>}, {pipeline_mode = #tpu.pipeline_mode<synchronous>, transform_indices = @transform_5, window_bounds = array<i64: 16, 48>}, {pipeline_mode = #tpu.pipeline_mode<synchronous>, transform_indices = @transform_6, window_bounds = array<i64: 1, 48>}, {pipeline_mode = #tpu.pipeline_mode<synchronous>, transform_indices = @transform_7, window_bounds = array<i64: 48, 128>}, {pipeline_mode = #tpu.pipeline_mode<synchronous>, transform_indices = @transform_8, window_bounds = array<i64: 1, 128>}, {transform_indices = @transform_9, window_bounds = array<i64: 1, 1, 128>}]} {
    %c0_i32 = arith.constant 0 : i32
    %0 = arith.cmpi eq, %arg1, %c0_i32 : i32
    %1 = arith.extui %0 : i1 to i32
    %c0_i32_0 = arith.constant 0 : i32
    %2 = arith.cmpi ne, %1, %c0_i32_0 : i32
    scf.if %2 {
      %cst_9 = arith.constant 0.000000e+00 : f32
      %11 = vector.broadcast %cst_9 : f32 to vector<1x32xf32>
      %c0_10 = arith.constant 0 : index
      %c0_11 = arith.constant 0 : index
      %12 = vector.load %arg12[%c0_10, %c0_11] : memref<1x32xf32, #tpu.memory_space<vmem>>, vector<1x32xf32>
      tpu.vector_store %arg12[%c0_10, %c0_11], %11 {strides = array<i32>} : memref<1x32xf32, #tpu.memory_space<vmem>>, vector<1x32xf32>,
    } else {
    }
    %c0 = arith.constant 0 : index
    %c0_1 = arith.constant 0 : index
    %3 = vector.load %arg12[%c0, %c0_1] : memref<1x32xf32, #tpu.memory_space<vmem>>, vector<1x32xf32>
    %c0_2 = arith.constant 0 : index
    %c0_3 = arith.constant 0 : index
    %c0_4 = arith.constant 0 : index
    %4 = vector.load %arg2[%c0_2, %c0_3, %c0_4] : memref<1x16x32xf32, #tpu.memory_space<vmem>>, vector<1x16x32xf32>
    %cst = arith.constant dense<0.000000e+00> : vector<1x32xf32>
    %5 = vector.multi_reduction <add>, %4, %cst [1] : vector<1x16x32xf32> to vector<1x32xf32>
    %6 = arith.addf %3, %5 : vector<1x32xf32>
    %c0_5 = arith.constant 0 : index
    %c0_6 = arith.constant 0 : index
    %7 = vector.load %arg12[%c0_5, %c0_6] : memref<1x32xf32, #tpu.memory_space<vmem>>, vector<1x32xf32>
    tpu.vector_store %arg12[%c0_5, %c0_6], %6 {strides = array<i32>} : memref<1x32xf32, #tpu.memory_space<vmem>>, vector<1x32xf32>,
    %c0_i32_7 = arith.constant 0 : i32
    %8 = arith.cmpi eq, %arg1, %c0_i32_7 : i32
    %9 = arith.extui %8 : i1 to i32
    %c0_i32_8 = arith.constant 0 : i32
    %10 = arith.cmpi ne, %9, %c0_i32_8 : i32
    scf.if %10 {
      %c0_9 = arith.constant 0 : index
      %c0_10 = arith.constant 0 : index
      %11 = vector.load %arg12[%c0_9, %c0_10] : memref<1x32xf32, #tpu.memory_space<vmem>>, vector<1x32xf32>
      %cst_11 = arith.constant 6.250000e-02 : f32
      %12 = vector.broadcast %cst_11 : f32 to vector<1x32xf32>
      %13 = arith.mulf %11, %12 : vector<1x32xf32>
      %c0_12 = arith.constant 0 : index
      %c0_13 = arith.constant 0 : index
      %14 = vector.load %arg3[%c0_12, %c0_13] : memref<32x32xf32, #tpu.memory_space<vmem>>, vector<32x32xf32>
      %cst_14 = arith.constant dense<0.000000e+00> : vector<1x32xf32>
      %15 = tpu.matmul %13, %14, %cst_14 {dimension_numbers = #tpu.dot_dimension_numbers<[1], [0], [0], [1], [0, 0, 1, 1], [], []>} : vector<1x32xf32>, vector<32x32xf32>, vector<1x32xf32> -> vector<1x32xf32>
      %c0_15 = arith.constant 0 : index
      %c0_16 = arith.constant 0 : index
      %16 = vector.load %arg4[%c0_15, %c0_16] : memref<1x32xf32, #tpu.memory_space<vmem>>, vector<1x32xf32>
      %17 = arith.addf %15, %16 : vector<1x32xf32>
      %c0_17 = arith.constant 0 : index
      %c0_18 = arith.constant 0 : index
      %18 = vector.load %arg5[%c0_17, %c0_18] : memref<32x16xf32, #tpu.memory_space<vmem>>, vector<32x16xf32>
      %cst_19 = arith.constant dense<0.000000e+00> : vector<1x16xf32>
      %19 = tpu.matmul %17, %18, %cst_19 {dimension_numbers = #tpu.dot_dimension_numbers<[1], [0], [0], [1], [0, 0, 1, 1], [], []>} : vector<1x32xf32>, vector<32x16xf32>, vector<1x16xf32> -> vector<1x16xf32>
      %c0_20 = arith.constant 0 : index
      %c0_21 = arith.constant 0 : index
      %20 = vector.load %arg6[%c0_20, %c0_21] : memref<1x16xf32, #tpu.memory_space<vmem>>, vector<1x16xf32>
      %21 = arith.addf %19, %20 : vector<1x16xf32>
      %c0_22 = arith.constant 0 : index
      %c0_23 = arith.constant 0 : index
      %22 = vector.load %arg7[%c0_22, %c0_23] : memref<16x48xf32, #tpu.memory_space<vmem>>, vector<16x48xf32>
      %cst_24 = arith.constant dense<0.000000e+00> : vector<1x48xf32>
      %23 = tpu.matmul %21, %22, %cst_24 {dimension_numbers = #tpu.dot_dimension_numbers<[1], [0], [0], [1], [0, 0, 1, 1], [], []>} : vector<1x16xf32>, vector<16x48xf32>, vector<1x48xf32> -> vector<1x48xf32>
      %c0_25 = arith.constant 0 : index
      %c0_26 = arith.constant 0 : index
      %24 = vector.load %arg8[%c0_25, %c0_26] : memref<1x48xf32, #tpu.memory_space<vmem>>, vector<1x48xf32>
      %25 = arith.addf %23, %24 : vector<1x48xf32>
      %c0_27 = arith.constant 0 : index
      %c0_28 = arith.constant 0 : index
      %26 = vector.load %arg9[%c0_27, %c0_28] : memref<48x128xf32, #tpu.memory_space<vmem>>, vector<48x128xf32>
      %cst_29 = arith.constant dense<0.000000e+00> : vector<1x128xf32>
      %27 = tpu.matmul %25, %26, %cst_29 {dimension_numbers = #tpu.dot_dimension_numbers<[1], [0], [0], [1], [0, 0, 1, 1], [], []>} : vector<1x48xf32>, vector<48x128xf32>, vector<1x128xf32> -> vector<1x128xf32>
      %c0_30 = arith.constant 0 : index
      %c0_31 = arith.constant 0 : index
      %28 = vector.load %arg10[%c0_30, %c0_31] : memref<1x128xf32, #tpu.memory_space<vmem>>, vector<1x128xf32>
      %29 = arith.addf %27, %28 : vector<1x128xf32>
      %c0_32 = arith.constant 0 : index
      %c0_33 = arith.constant 0 : index
      %c0_34 = arith.constant 0 : index
      %30 = vector.load %arg11[%c0_32, %c0_33, %c0_34] : memref<1x1x128xf32, #tpu.memory_space<vmem>>, vector<1x1x128xf32>
      %31 = vector.shape_cast %30 : vector<1x1x128xf32> to vector<1x128xf32>
      %32 = vector.shape_cast %29 : vector<1x128xf32> to vector<1x1x128xf32>
      tpu.vector_store %arg11[%c0_32, %c0_33, %c0_34], %32 {strides = array<i32>} : memref<1x1x128xf32, #tpu.memory_space<vmem>>, vector<1x1x128xf32>,
    } else {
    }
    return
  }
  func.func @transform_0(%arg0: i32, %arg1: i32) -> (i32, i32, i32) {
    %c0_i32 = arith.constant 0 : i32
    %c0_i32_0 = arith.constant 0 : i32
    return %arg0, %arg1, %c0_i32 : i32, i32, i32
  }
  func.func @transform_1(%arg0: i32, %arg1: i32) -> (i32, i32) {
    %c0_i32 = arith.constant 0 : i32
    %c0_i32_0 = arith.constant 0 : i32
    %c0_i32_1 = arith.constant 0 : i32
    return %c0_i32, %c0_i32_0 : i32, i32
  }
  func.func @transform_2(%arg0: i32, %arg1: i32) -> (i32, i32) {
    %c0_i32 = arith.constant 0 : i32
    %c0_i32_0 = arith.constant 0 : i32
    %c0_i32_1 = arith.constant 0 : i32
    return %c0_i32, %c0_i32_0 : i32, i32
  }
  func.func @transform_3(%arg0: i32, %arg1: i32) -> (i32, i32) {
    %c0_i32 = arith.constant 0 : i32
    %c0_i32_0 = arith.constant 0 : i32
    %c0_i32_1 = arith.constant 0 : i32
    return %c0_i32, %c0_i32_0 : i32, i32
  }
  func.func @transform_4(%arg0: i32, %arg1: i32) -> (i32, i32) {
    %c0_i32 = arith.constant 0 : i32
    %c0_i32_0 = arith.constant 0 : i32
    %c0_i32_1 = arith.constant 0 : i32
    return %c0_i32, %c0_i32_0 : i32, i32
  }
  func.func @transform_5(%arg0: i32, %arg1: i32) -> (i32, i32) {
    %c0_i32 = arith.constant 0 : i32
    %c0_i32_0 = arith.constant 0 : i32
    %c0_i32_1 = arith.constant 0 : i32
    return %c0_i32, %c0_i32_0 : i32, i32
  }
  func.func @transform_6(%arg0: i32, %arg1: i32) -> (i32, i32) {
    %c0_i32 = arith.constant 0 : i32
    %c0_i32_0 = arith.constant 0 : i32
    %c0_i32_1 = arith.constant 0 : i32
    return %c0_i32, %c0_i32_0 : i32, i32
  }
  func.func @transform_7(%arg0: i32, %arg1: i32) -> (i32, i32) {
    %c0_i32 = arith.constant 0 : i32
    %c0_i32_0 = arith.constant 0 : i32
    %c0_i32_1 = arith.constant 0 : i32
    return %c0_i32, %c0_i32_0 : i32, i32
  }
  func.func @transform_8(%arg0: i32, %arg1: i32) -> (i32, i32) {
    %c0_i32 = arith.constant 0 : i32
    %c0_i32_0 = arith.constant 0 : i32
    %c0_i32_1 = arith.constant 0 : i32
    return %c0_i32, %c0_i32_0 : i32, i32
  }
  func.func @transform_9(%arg0: i32, %arg1: i32) -> (i32, i32, i32) {
    %c0_i32 = arith.constant 0 : i32
    %c0_i32_0 = arith.constant 0 : i32
    %c0_i32_1 = arith.constant 0 : i32
    return %arg0, %c0_i32, %c0_i32_0 : i32, i32, i32
  }
}

</mosaic_0001>

<bundles_post_ra>
// kernel: mtl_model_forward.1
= control target key start
LH: loop header
LB: loop body
LE: loop exit
PB: predicated region body
PF: predicated region fallthrough
CT: control target
= control target key end

     0   :  { %s1477_s0 = inlined_call_operand.hbm [shape: f32[2,16,32], index: 0, kind: input, shape index: {}]   ;;  %s1478_s1 = inlined_call_operand.hbm [shape: f32[32,32], index: 1, kind: input, shape index: {}]   ;;  %s1479_s2 = inlined_call_operand.vmem [shape: f32[1,32], index: 2, kind: input, shape index: {}]   ;;  %s1480_s3 = inlined_call_operand.vmem [shape: f32[32,16], index: 3, kind: input, shape index: {}]   ;;  %s1481_s4 = inlined_call_operand.vmem [shape: f32[1,16], index: 4, kind: input, shape index: {}]   ;;  %s1482_s5 = inlined_call_operand.hbm [shape: f32[16,48], index: 5, kind: input, shape index: {}]   ;;  %s1483_s6 = inlined_call_operand.vmem [shape: f32[1,48], index: 6, kind: input, shape index: {}]   ;;  %s1484_s7 = inlined_call_operand.vmem [shape: f32[48,128], index: 7, kind: input, shape index: {}]   ;;  %s1485_s8 = inlined_call_operand.vmem [shape: f32[1,128], index: 8, kind: input, shape index: {}]   ;;  %s1486_s9 = inlined_call_operand.vmem [shape: f32[2,1,128], index: 9, kind: output, shape index: {}]  }
   0x1   :  { %1492 = sst [smem:[#allocation10_spill]] %s1486_s9 }
   0x2   :  { %14 = vsyncpa [#allocation4], 0 }
   0x3   :  { %16 = vsyncpa [#allocation4 + $0x1], 0 }
   0x4   :  { %17 = vsyncpa [#allocation6], 0  ;;  %s1215_s30 = smov 0   ;;  %s1217_s10 = smov 0  }
   0x5   :  { %s1219_s11 = smov 0   ;;  %s1221_s12 = smov 0  }
   0x6   :  { %s1223_s13 = smov 0   ;;  %s1225_s14 = smov 0  }
   0x7 LB: > { %s826_s15 = sadd.s32 4294967295, %s1155_s14   ;;  %p57_p0 = scmp.ne.s32.totalorder %s1139_s10, %s1135_s30  ;;  %s1155_s14 = sphi %s1225_s14, %s23_s14   ;;  %s1151_s13 = sphi %s1223_s13, %s1508_s13   ;;  %s1147_s12 = sphi %s1221_s12, %s1507_s12   ;;  %s1143_s11 = sphi %s1219_s11, %s1506_s11   ;;  %s1139_s10 = sphi %s1217_s10, %s1505_s10   ;;  %s1135_s30 = sphi %s1215_s30, %s1504_s30  }
   0x8   : > { %p1245_p1 = scmp.eq.s32.totalorder %s826_s15, 0  ;;  %p828_p2 = scmp.ge.s32.totalorder %s1155_s14, 1 }
   0x9   : > { %p262_p3 = scmp.lt.s32.totalorder %s1155_s14, 3  ;;  %s1157_s19 = smov [#allocation5]  }
   0xa   : > { %s1493_s16 = scalar_select %p1245_p1, 1, 0 }
   0xb   : > { %p1253_p4 = por %p1245_p1, %p57_p0  ;;  %p1257_p5 = pnand %p828_p2, %p262_p3 }
   0xc   : > { %s274_s20 = sshll.u32 %s1157_s19, 4  ;;  %s1158_s22 = smov [#allocation7]   ;;  %s275_s20 = int_to_ptr.vmem [resolvable:$true] %s274_s20 }
   0xd   : > { %s1494_s17 = scalar_select %p1253_p4, 1, 0 }
   0xe   : > { %s1495_s18 = scalar_select %p1257_p5, 1, 0 }
   0xf   : > { %p944_p6 = pneg %p1257_p5  ;;  %s296_s23 = sshll.u32 %s1158_s22, 4  ;;  %s1269_s23 = int_to_ptr.vmem [resolvable:$true] %s296_s23 }
  0x10   : > { %s1015_s26 = scalar_lea.hbm %s1478_s1, 512 }
  0x11   : > { %p1265_p7 = pnand %p944_p6, %p1245_p1  ;;  %p1016_p8 = scmp.ne.s32.totalorder %s1478_s1, %s1015_s26 }
  0x12   : > { %p1022_p12 = scmp.lt.u32.totalorder %s1015_s26, %s1478_s1 }
  0x13   : > { %p1017_p9 = pneg %p1265_p7 }
  0x15   : > { %p1018_p10 = pnand %p1017_p9, %p1016_p8 }
  0x17   : > { %p1019_p11 = pneg %p1018_p10 }
  0x19   : > { %p1024_p13 = pnand %p1022_p12, %p1019_p11 }
  0x1b   : > { %1027 = shalt.err (!%p1024_p13)
}
  0x1c   : > { %s1028_s15 = scalar_lea.vmem %s275_s20, 512  ;;  %p1036_p6 = scmp.lt.s32.totalorder %s275_s20, %s275_s20 }
  0x1d   : > { %p1029_p0 = scmp.ne.s32.totalorder %s275_s20, %s1028_s15  ;;  %p1037_p1 = scmp.lt.s32.totalorder %s1028_s15, %s1028_s15 }
  0x1f   : > { %p1031_p2 = pnand %p1029_p0, %p1017_p9  ;;  %p1038_p4 = por %p1037_p1, %p1036_p6 }
  0x21   : > { %p1032_p3 = pneg %p1031_p2 }
  0x23   : > { %p1039_p5 = pnand %p1038_p4, %p1032_p3 }
  0x25   : > { %1042 = shalt.err (!%p1039_p5)
}
  0x26   : > { %s1491_s19 = smov 128   ;;  %s1160_s22 = smov 8  }
  0x27   : > { %947 = dma.hbm_to_vmem [thread:$0]  (!%p1265_p7), %s1478_s1, 512, %s275_s20, [#allocation6], %s1491_s19, %s1491_s19, %s1160_s22  }
  0x28   : > { %s1043_s28 = scalar_lea.hbm %s1482_s5, 256 }
  0x29   : > { %p1044_p1 = scmp.ne.s32.totalorder %s1482_s5, %s1043_s28  ;;  %p1050_p8 = scmp.lt.u32.totalorder %s1043_s28, %s1482_s5 }
  0x2b   : > { %p1046_p4 = pnand %p1044_p1, %p1017_p9 }
  0x2d   : > { %p1047_p5 = pneg %p1046_p4 }
  0x2f   : > { %p1052_p10 = pnand %p1050_p8, %p1047_p5 }
  0x31   : > { %1055 = shalt.err (!%p1052_p10)
}
  0x32   : > { %s1056_s20 = scalar_lea.vmem %s1269_s23, 256  ;;  %p1064_p0 = scmp.lt.s32.totalorder %s1269_s23, %s1269_s23 }
  0x33   : > { %p1057_p11 = scmp.ne.s32.totalorder %s1269_s23, %s1056_s20  ;;  %p1065_p2 = scmp.lt.s32.totalorder %s1056_s20, %s1056_s20 }
  0x35   : > { %p1059_p12 = pnand %p1057_p11, %p1017_p9  ;;  %p1066_p3 = por %p1065_p2, %p1064_p0 }
  0x37   : > { %p1060_p13 = pneg %p1059_p12 }
  0x39   : > { %p1067_p6 = pnand %p1066_p3, %p1060_p13 }
  0x3b   : > { %1070 = shalt.err (!%p1067_p6)
}
  0x3c   : > { %950 = dma.hbm_to_vmem [thread:$0]  (!%p1265_p7), %s1482_s5, 256, %s1269_s23, [#allocation6], %s1491_s19, %s1491_s19, %s1160_s22  }
  0x3d   : > { %s35_s25 = sadd.s32 1, %s1151_s13  ;;  %s44_s21 = sadd.s32 1, %s1143_s11 }
  0x3e   : > { %p37_p9 = scmp.ge.s32.totalorder %s35_s25, 2  ;;  %p51_p1 = scmp.ne.s32.totalorder %s1143_s11, %s1139_s10 }
  0x3f   : > { %p52_p4 = scmp.eq.s32.totalorder %s1155_s14, 0  ;;  %p957_p5 = scmp.lt.s32.totalorder %s1155_s14, 2 }
  0x40   : > { %s1510_s25 = smov (%p37_p9, %s35_s25), 0  ;;  %s319_s26 = sand.u32 1, %s1143_s11  }
  0x41   : > { %p53_p8 = por %p52_p4, %p51_p1  ;;  %s39_s27 = ssub.s32 %s1151_s13, %s1510_s25 }
  0x42   : > { %p42_p10 = scmp.eq.s32.totalorder %s39_s27, 0  ;;  %s832_s28 = sshll.u32 %s319_s26, 4 }
  0x43   : > { %s845_s29 = sshll.u32 %s1151_s13, 8  ;;  %s323_s9 = scalar_lea.vmem [#allocation3], %s832_s28 }
  0x44   : > { %s1337_s30 = scalar_select %p42_p10, %s1143_s11, %s44_s21  }
  0x45   : > { %s1342_s20 = scalar_lea.hbm %s1477_s0, %s845_s29  ;;  %s332_s24 = sshll.u32 %s323_s9, 4  ;;  %s1344_s24 = int_to_ptr.vmem [resolvable:$true] %s332_s24 }
  0x46   : > { %p1348_p7 = pnand %p957_p5, %p53_p8  ;;  %s1352_s21 = scalar_lea.sflag [#allocation4], %s319_s26 }
  0x47   : > { %s1071_s15 = scalar_lea.hbm %s1342_s20, 256  ;;  %s1076_s23 = scalar_lea.hbm %s1477_s0, 512 }
  0x48   : > { %p1072_p11 = scmp.ne.s32.totalorder %s1342_s20, %s1071_s15  ;;  %p1073_p12 = pneg %p1348_p7 }
  0x49   : > { %p1077_p2 = scmp.lt.u32.totalorder %s1342_s20, %s1477_s0  ;;  %p1078_p3 = scmp.lt.u32.totalorder %s1076_s23, %s1071_s15 }
  0x4a   : > { %p1074_p13 = pnand %p1073_p12, %p1072_p11  ;;  %p1080_p9 = scmp.lt.u32.totalorder %s1071_s15, %s1342_s20 }
  0x4b   : > { %p1079_p6 = por %p1078_p3, %p1077_p2 }
  0x4c   : > { %p1075_p0 = pneg %p1074_p13 }
  0x4d   : > { %p1081_p1 = por %p1080_p9, %p1079_p6 }
  0x4f   : > { %p1082_p4 = pnand %p1081_p1, %p1075_p0 }
  0x51   : > { %1085 = shalt.err (!%p1082_p4)
}
  0x52   : > { %s1086_s26 = scalar_lea.vmem %s1344_s24, 256  ;;  %s1161_s28 = smov [#allocation3]  }
  0x53   : > { %p1087_p5 = scmp.ne.s32.totalorder %s1344_s24, %s1086_s26  ;;  %s1091_s29 = sshll.u32 %s1161_s28, 4  ;;  %s1092_s29 = int_to_ptr.vmem [resolvable:$false] %s1091_s29 }
  0x54   : > { %s1093_s19 = scalar_lea.vmem %s1092_s29, 512  ;;  %p1094_p11 = scmp.lt.s32.totalorder %s1344_s24, %s1092_s29 }
  0x55   : > { %p1089_p8 = pnand %p1087_p5, %p1073_p12  ;;  %p1095_p13 = scmp.lt.s32.totalorder %s1093_s19, %s1086_s26 }
  0x57   : > { %p1090_p10 = pneg %p1089_p8  ;;  %p1096_p2 = por %p1095_p13, %p1094_p11 }
  0x59   : > { %p1097_p3 = pnand %p1096_p2, %p1090_p10 }
  0x5b   : > { %1100 = shalt.err (!%p1097_p3)
}
  0x5c   : > { %s1498_s15 = smov 128   ;;  %p1499_p12 = scmp.ne.s32.totalorder %s1495_s18, 0 }
  0x5d   : > { %954 = dma.hbm_to_vmem [thread:$0]  (!%p1348_p7), %s1342_s20, 256, %s1344_s24, %s1352_s21, %s1498_s15, %s1498_s15, %s1160_s22  }
  0x5e   : > { %344 = sbr.rel (%p1499_p12) target bundleno = 993 (0x3e1), region = 56  ;;  %s346_s23 = sand.u32 (!%p1499_p12), 1, %s1139_s10  }
  0x5f   : > { %s836_s9 = sshll.u32 (!%p1499_p12), %s346_s23, 4  ;;  %s347_s26 = scalar_lea.sflag (!%p1499_p12), [#allocation4], %s346_s23 }
  0x60   : > { %s350_s28 = scalar_lea.vmem (!%p1499_p12), [#allocation3], %s836_s9  ;;  %p1500_p0 = scmp.ne.s32.totalorder (!%p1499_p12), %s1494_s17, 0 }
  0x65   : > { %1126 = dma.done.wait (%p1500_p0), %s347_s26, 256  }
  0x66   : > { %1128 = vsyncadd (%p1500_p0), %s347_s26, 4294967040  ;;  %p1501_p6 = scmp.ne.s32.totalorder %s1493_s16, 0 }
  0x68   : > { %1130 = dma.done.wait (%p1501_p6), [#allocation6], 768  }
  0x69   : > { %1132 = vsyncadd (%p1501_p6), [#allocation6], 4294966528  ;;  %vm399_vm0 = vcmask 253952   ;;  %v1162_v0 = vmov 0.0|0.0   ;;  %v1163_v1 = vmov 0.0   ;;  %vm1164_vm1 = vmmov 0  }
  0x6a   : > { %910 = vmatprep.subr.bf16.mxu0 %v1162_v0  ;;  %400 = vst.msk [vmem:[#allocation2] sm:$0x1] %vm399_vm0, %v1163_v1  ;;  %874 = vmatprep.mubr.msk.f32.mxu0 %vm1164_vm1, %v1163_v1  ;;  %vm404_vm2 = vcmask 261120   ;;  %v422_v2 = vld [vmem:[#allocation5] sm:$0xff]  ;;  %v423_v3 = vld [vmem:[#allocation5 + $0x8] sm:$0xff]  ;;  %v424_v4 = vld [vmem:[#allocation5 + $0x10] sm:$0xff] }
  0x6b   : > { %916 = vmatprep.subr.bf16.mxu1 %v1162_v0  ;;  %885 = vmatprep.mubr.msk.f32.mxu1 %vm1164_vm1, %v1163_v1  ;;  %v911_v5 = vpack.c.bf16 %v423_v3, %v422_v2  ;;  %v425_v6 = vld [vmem:[#allocation5 + $0x18] sm:$0xff]  ;;  %v402_v7 = vld [vmem:[%s350_s28] sm:$0xff]  ;;  %v579_v30 = vld [vmem:[#allocation7 + $0x8] sm:$0xff]  ;;  %vm581_vm3 = vcmask 130048   ;;  %vm662_vm4 = vcmask 392192   ;;  %p392_p7 = scmp.lt.s32.totalorder %s1147_s12, 1 }
  0x6c   : > { %v403_v8 = vld [vmem:[%s350_s28 + $0x8] sm:$0xff]  ;;  %v405_v9 = vsel %vm404_vm2, %v402_v7, 0.0  ;;  %v914_v12 = vpack.c.bf16 %v425_v6, %v424_v4  ;;  %v578_v29 = vld [vmem:[#allocation7] sm:$0xff]  ;;  %s1502_s16 = sld [smem:[#allocation10_spill]] }
  0x6d   : > { %v500_v10 = vld [vmem:[%s1480_s3] sm:$0xff]  ;;  %v501_v11 = vld [vmem:[%s1480_s3 + $0x8] sm:$0xff]  ;;  %912 = vmatpush3.bf16.msra.mxu0 %v911_v5  ;;  %v406_v13 = vsel %vm404_vm2, %v403_v8, 0.0  ;;  %v502_v26 = vld [vmem:[%s1480_s3 + $0x10] sm:$0xff]  ;;  %v923_v31 = vpack.c.bf16 %v579_v30, %v578_v29  ;;  %s1512_s12 = smov (!%p392_p7, %s1147_s12), 1 }
  0x6e   : > { %v917_v14 = vpack.c.bf16 %v501_v11, %v500_v10  ;;  %913 = vmatprep.subr.bf16.mxu0 %v1162_v0  ;;  %v407_v15 = vadd.f32 %v406_v13, %v405_v9  ;;  %v503_v27 = vld [vmem:[%s1480_s3 + $0x18] sm:$0xff]  ;;  %v426_v32 = vld [vmem:[%s1479_s2] sm:$0x1]  ;;  %v656_v37 = vld [vmem:[%s1484_s7 + $0x8] sm:$0xff] }
  0x6f   : > { %v920_v28 = vpack.c.bf16 %v503_v27, %v502_v26  ;;  %v655_v36 = vld [vmem:[%s1484_s7] sm:$0xff]  ;;  %v657_v38 = vld [vmem:[%s1484_s7 + $0x10] sm:$0xff]  ;;  %v658_v40 = vld [vmem:[%s1484_s7 + $0x18] sm:$0xff] }
  0x70   : > { %918 = vmatpush3.bf16.msra.mxu1 %v917_v14  ;;  %v408_v16 = vrot.slane %v407_v15, 4  ;;  %v926_v39 = vpack.c.bf16 %v656_v37, %v655_v36  ;;  %v929_v41 = vpack.c.bf16 %v658_v40, %v657_v38  ;;  %v504_v42 = vld [vmem:[%s1481_s4] sm:$0x1]  ;;  %v660_v47 = vld [vmem:[%s1484_s7 + $0x28] sm:$0xff] }
  0x71   : > { %919 = vmatprep.subr.bf16.mxu1 %v1162_v0  ;;  %915 = vmatpush3.bf16.msra.mxu0 %v914_v12  ;;  %v401_v21 = vld [vmem:[#allocation2] sm:$0x1] }
  0x72   : > { %v409_v17 = vadd.f32 %v408_v16, %v407_v15  ;;  %922 = vmatprep.subr.bf16.mxu0 %v1162_v0  ;;  %v659_v46 = vld [vmem:[%s1484_s7 + $0x20] sm:$0xff]  ;;  %s394_s17 = scalar_lea.vmem %s1502_s16, %s1512_s12 }
  0x73   : > { %v932_v48 = vpack.c.bf16 %v660_v47, %v659_v46  ;;  %v580_v49 = vld [vmem:[%s1483_s6] sm:$0x1] }
  0x74   : > { %v410_v18 = vrot.slane %v409_v17, 2  ;;  %921 = vmatpush3.bf16.msra.mxu1 %v920_v28  ;;  %v661_v53 = vld [vmem:[%s1485_s8] sm:$0x1] }
  0x75   : > { %925 = vmatprep.subr.bf16.mxu1 %v1162_v0 }
  0x76   : > { %v411_v19 = vadd.f32 %v410_v18, %v409_v17 }
  0x78   : > { %v412_v20 = vrot.slane %v411_v19, 1 }
  0x7a   : > { %v413_v22 = vadd.f32 %v412_v20, %v411_v19 }
  0x7c   : > { %v414_v23 = vadd.f32 %v413_v22, %v401_v21 }
  0x7e   : > { %416 = vst.msk [vmem:[#allocation2] sm:$0x1] %vm399_vm0, %v414_v23 }
  0x85   : > { %v420_v24 = vld [vmem:[#allocation2] sm:$0x1] }
  0x86   : > { %v421_v25 = vmul.f32 0.0625, %v420_v24 }
  0x88   : > { %875 = vmatmul.mubr.msk.f32.vlgmr.msra.gmra.mrb[0].mxu0 %vm404_vm2, %v421_v25 }
  0x89   : > { %892 = vmatprep.mubr.msk.f32.mxu0 %vm1164_vm1, %v1163_v1  ;;  %924 = vmatpush3.bf16.msra.mxu0 %v923_v31 }
 0x15b   : > { %v496_v33 = vpop.f32.mrb[0].mxu0 }
 0x15c   : > { %v497_v34 = vadd.f32 %v496_v33, %v426_v32  ;;  %v876_v35 = vpop.f32.mrb[1].mxu0 }
 0x15e   : > { %886 = vmatmul.mubr.msk.f32.vlgmr.msra.gmra.mrb[0].mxu1 %vm404_vm2, %v497_v34 }
 0x15f   : > { %907 = vmatprep.mubr.msk.f32.mxu1 %vm1164_vm1, %v1163_v1  ;;  %927 = vmatpush3.bf16.msra.mxu1 %v926_v39 }
 0x160   : > { %928 = vmatprep.subr.bf16.mxu1 %v1162_v0 }
 0x163   : > { %930 = vmatpush3.bf16.msra.mxu1 %v929_v41 }
 0x164   : > { %931 = vmatprep.subr.bf16.mxu1 %v1162_v0 }
 0x167   : > { %933 = vmatpush3.bf16.msra.mxu1 %v932_v48 }
 0x231   : > { %v574_v43 = vpop.f32.mrb[0].mxu1 }
 0x232   : > { %v575_v44 = vadd.f32 %v574_v43, %v504_v42  ;;  %v887_v45 = vpop.f32.mrb[1].mxu1 }
 0x234   : > { %893 = vmatmul.mubr.msk.f32.vlgmr.msra.gmra.mrb[2].mxu0 %vm581_vm3, %v575_v44 }
 0x307   : > { %v651_v50 = vpop.f32.mrb[2].mxu0 }
 0x308   : > { %v652_v51 = vadd.f32 %v651_v50, %v580_v49  ;;  %v894_v52 = vpop.f32.mrb[3].mxu0 }
 0x30a   : > { %908 = vmatmul.mubr.msk.f32.vlgmr.msra.gmra.mrb[2].mxu1 %vm662_vm4, %v652_v51 }
 0x3dd   : > { %v732_v54 = vpop.f32.mrb[2].mxu1 }
 0x3de   : > { %v733_v55 = vadd.f32 %v732_v54, %v661_v53  ;;  %v909_v56 = vpop.f32.mrb[3].mxu1 }
 0x3e0   : > { %736 = vst [vmem:[%s394_s17] sm:$0x1] %v733_v55 }
 0x3e1 PF: > { %s23_s14 = sadd.s32 1, %s1155_s14   ;;  %s1503_s18 = smov %s1337_s30 }
 0x3e2   : > { %p20_p9 = scmp.ge.s32.totalorder %s23_s14, 4   ;;  %s1504_s30 = smov %s1139_s10 }
 0x3e3   : > { %s1505_s10 = smov %s1143_s11  ;;  %s1506_s11 = smov %s1503_s18 }
 0x3e4   : > { %s1507_s12 = smov %s1151_s13  ;;  %s1508_s13 = smov %s1510_s25 }
 0x3e5   :  { %22 = sbr.rel (!%p20_p9) target bundleno = 7 (0x7), region = 112 }
 0x3ec   :  { %754 = vsyncpa [#allocation4], 1 }
 0x3ed   :  { %756 = vsyncpa [#allocation4 + $0x1], 1 }
 0x3ee   :  { %757 = vsyncpa [#allocation6], 1 }

</bundles_post_ra>
